<compile_context>
chip_gen: v5e
topology: v5e:2x2
jax: 0.10.0
libtpu: 0.0.40
codegen_flags: <defaults>
</compile_context>

<pallas_src>
import functools

import jax
import jax.numpy as jnp
from jax.experimental import pallas as pl
from jax.experimental.pallas import tpu as pltpu


# ---------------------------------------------------------------------------
# Pallas kernel: conv (kh*kw shifted taps, f32 acc) + bias + sigmoid, fused
# ---------------------------------------------------------------------------
def _filter_conv_kernel(x_ref, w_ref, b_ref, o_ref, *, kh, kw, wp, n_tiles):
    # x_ref: (Cin_p, (Hp+1)*Wp)   bf16  channel-major flattened padded image (this batch)
    # w_ref: (kh*kw, Cout, Cin_p) bf16  per-tap weight matrices
    # b_ref: (Cout, 1)            f32   bias (broadcast along lanes)
    # o_ref: (Cout, th*Wp)        bf16  output tile; spatial on lanes.  Columns
    #                                   x >= Wo are garbage and sliced off in the wrapper.
    n = o_ref.shape[-1]          # flattened output positions in this tile (th*Wp)
    cout = o_ref.shape[0]

    # Bring the needed spatial window into vregs once; every tap below is a
    # static value slice (cheap lane relayout), not a separate VMEM load.
    if n_tiles == 1:
        window = x_ref[...]                                     # whole image, static offsets
    else:
        # tiled path: th*Wp is a multiple of 128 -> lane-aligned dynamic window
        base = pl.multiple_of(pl.program_id(1) * n, 128)
        window = x_ref[:, pl.ds(base, n + (kh - 1) * wp + (kw - 1))]

    acc = jnp.zeros((cout, n), jnp.float32)      # stays in vregs at the chosen tile size
    for dy in range(kh):                         # static, fully unrolled kh*kw taps
        for dx in range(kw):
            s = dy * wp + dx
            patch = window[:, s:s + n]           # (Cin_p, n) bf16, shifted view
            acc = acc + jnp.dot(w_ref[dy * kw + dx], patch,
                                preferred_element_type=jnp.float32)
    # TODO(synk): stack the kw dx-taps along the contraction (K=kw*Cin_p, fewer/deeper
    # MXU pushes) once Cin/Cout grow enough for the kernel to leave the HBM-bound regime.

    acc = acc + b_ref[...]
    # sigmoid = 1 / (1 + exp(-acc)): exp and approx reciprocal both ride the EUP slot
    o_ref[...] = pl.reciprocal(1.0 + jnp.exp(-acc), approx=True).astype(o_ref.dtype)


# ---------------------------------------------------------------------------
# Tiling / sizing helpers
# ---------------------------------------------------------------------------
def _round_up(v, m):
    return (v + m - 1) // m * m


def _pick_row_tile(ho, wp, cout):
    """Output rows per grid step.

    Small images: whole image per batch step (all tap offsets static).
    Large images: largest divisor th of ho with th*wp a multiple of 128
    (lane-aligned output block) that keeps the f32 accumulator ~<=64 KiB.
    """
    budget = max(256, (64 * 1024) // (4 * cout))     # flattened positions per step
    if ho * wp <= budget:
        return ho, 1
    cands = [t for t in range(1, ho) if ho % t == 0
             and (t * wp) % 128 == 0 and t * wp <= budget]
    if cands:
        t = max(cands)
        return t, ho // t
    # TODO(synk): halo-DMA (manual double-buffered make_async_copy) for shapes with no
    # lane-aligned divisor; until then fall back to one full-image step per batch.
    return ho, 1


def _vmem_cap_bytes():
    # ~75% of physical VMEM: ~48 MiB on v7x (64 MiB/TC), ~96 MiB on v5e/v6e (128 MiB).
    try:
        return int(pltpu.get_tpu_info().vmem_capacity_bytes) * 3 // 4
    except Exception:
        return 48 * 1024 * 1024


# ---------------------------------------------------------------------------
# FilterNN forward: NCHW in -> NCHW out (conv stride=1, padding=k//2, sigmoid)
# ---------------------------------------------------------------------------
def filter_nn_forward(x_nchw, weight_oihw, bias):
    B, cin, H, W = x_nchw.shape
    cout, cin_w, kh, kw = weight_oihw.shape
    assert cin == cin_w
    p = kh // 2                                   # module: padding = kernel_size // 2
    Hp, Wp = H + 2 * p, W + 2 * p
    Ho, Wo = Hp - kh + 1, Wp - kw + 1

    cin_p = cin + (-cin) % 8                      # sublane-aligned channel count
    Lg = (Hp + 1) * Wp                            # +1 zero guard row so the last tap's
                                                  # flat shifted slice stays in bounds

    # --- glue (no transposes): pad channels + spatial, flatten spatial, cast bf16
    xp = jnp.pad(x_nchw, ((0, 0), (0, cin_p - cin), (p, p + 1), (p, p)))
    x_flat = xp.reshape(B, cin_p, Lg).astype(jnp.bfloat16)

    # weights: (Cout, Cin, kh, kw) -> (kh*kw, Cout, Cin_p), bf16
    w_pad = jnp.pad(weight_oihw, ((0, 0), (0, cin_p - cin), (0, 0), (0, 0)))
    wmat = jnp.transpose(w_pad, (2, 3, 0, 1)).reshape(kh * kw, cout, cin_p)
    wmat = wmat.astype(jnp.bfloat16)
    bias2d = bias.reshape(cout, 1).astype(jnp.float32)

    th, n_tiles = _pick_row_tile(Ho, Wp, cout)
    n = th * Wp

    # physical (sublane/lane padded) VMEM footprints, x2 for default double buffering
    x_blk = _round_up(cin_p, 16) * _round_up(Lg, 128) * 2
    w_blk = kh * kw * _round_up(cout, 16) * _round_up(cin_p, 128) * 2
    b_blk = _round_up(cout, 8) * 128 * 4
    o_blk = _round_up(cout, 16) * _round_up(n, 128) * 2
    need = 2 * (x_blk + w_blk + b_blk + o_blk) + (2 << 20)
    vmem_limit = int(min(max(need, 16 << 20), max(_vmem_cap_bytes(), 16 << 20)))

    cost = pl.CostEstimate(
        flops=2 * B * Ho * Wp * kh * kw * cin_p * cout,
        transcendentals=B * Ho * Wp * cout,
        # the image crosses HBM once per batch (block index constant over the tile axis)
        bytes_accessed=(B * cin_p * Lg * 2 + kh * kw * cout * cin_p * 2 + cout * 4
                        + B * cout * Ho * Wp * 2),
    )

    out_flat = pl.pallas_call(
        functools.partial(_filter_conv_kernel, kh=kh, kw=kw, wp=Wp, n_tiles=n_tiles),
        out_shape=jax.ShapeDtypeStruct((B, cout, Ho * Wp), jnp.bfloat16),
        grid_spec=pltpu.PrefetchScalarGridSpec(
            num_scalar_prefetch=0,
            grid=(B, n_tiles),
            in_specs=[
                # whole padded image resident per batch; re-DMA'd only when b changes.
                # TODO(synk): halo-tile (manual double-buffered make_async_copy) or
                # pipeline_mode=pl.Buffered(1) if 2x image bytes ever nears VMEM capacity.
                pl.BlockSpec((None, cin_p, Lg), lambda b, r: (b, 0, 0)),
                pl.BlockSpec((kh * kw, cout, cin_p), lambda b, r: (0, 0, 0)),
                pl.BlockSpec((cout, 1), lambda b, r: (0, 0)),
            ],
            out_specs=pl.BlockSpec((None, cout, n), lambda b, r: (b, 0, r)),
        ),
        compiler_params=pltpu.CompilerParams(
            dimension_semantics=("parallel", "parallel"),
            vmem_limit_bytes=vmem_limit,
        ),
        cost_estimate=cost,
    )(x_flat, wmat, bias2d)

    # drop the padded-width garbage columns; result is already channel-major (NCHW)
    out = out_flat.reshape(B, cout, Ho, Wp)[:, :, :, :Wo].astype(jnp.float32)
    return out


# ---------------------------------------------------------------------------
# Self-test
# ---------------------------------------------------------------------------
if __name__ == "__main__":
    def run_case(key, B, Cin, Cout, H, W, ksize):
        k_x, k_w, k_b = jax.random.split(key, 3)
        x = jax.random.normal(k_x, (B, Cin, H, W), jnp.float32)
        fan_in = Cin * ksize * ksize
        w = jax.random.normal(k_w, (Cout, Cin, ksize, ksize), jnp.float32) * (2.0 / fan_in) ** 0.5
        b = jax.random.normal(k_b, (Cout,), jnp.float32) * 0.05

        out = jax.block_until_ready(jax.jit(filter_nn_forward)(x, w, b))

        pad = ksize // 2
        ref = jax.lax.conv_general_dilated(
            x, w, window_strides=(1, 1), padding=[(pad, pad), (pad, pad)],
            dimension_numbers=("NCHW", "OIHW", "NCHW"))
        ref = jax.nn.sigmoid(ref + b.reshape(1, -1, 1, 1))

        assert out.shape == ref.shape, (out.shape, ref.shape)
        assert out.dtype == jnp.float32
        err = float(jnp.max(jnp.abs(out - ref)))
        assert err < 2e-2, f"max abs err vs reference: {err}"

    key = jax.random.PRNGKey(0)
    k1, k2 = jax.random.split(key)

    # opt.in_channels=4, opt.out_channels=32, kernel_size=3 (padding=1), 16x16, batch=2
    run_case(k1, B=2, Cin=4, Cout=32, H=16, W=16, ksize=3)
    # second FilterNN config: kernel_size=5 (padding=2), Cin not a multiple of 8
    run_case(k2, B=2, Cin=3, Cout=16, H=20, W=20, ksize=5)

    print("KERNEL_OK")
</pallas_src>

<mosaic_0001>
module attributes {stable_mosaic.version = 11 : i64} {
  func.func @_filter_conv_kernel(%arg0: i32, %arg1: i32, %arg2: memref<1x8x342xbf16, #tpu.memory_space<vmem>>, %arg3: memref<9x32x8xbf16, #tpu.memory_space<vmem>>, %arg4: memref<32x1xf32, #tpu.memory_space<vmem>>, %arg5: memref<1x32x288xbf16, #tpu.memory_space<vmem>>) attributes {dimension_semantics = [#tpu.dimension_semantics<parallel>, #tpu.dimension_semantics<parallel>], iteration_bounds = array<i64: 2, 1>, scalar_prefetch = 0 : i64, scratch_operands = 0 : i64, tpu.core_type = #tpu.core_type<tc>, window_params = [{transform_indices = @transform_0, window_bounds = array<i64: 1, 8, 342>}, {pipeline_mode = #tpu.pipeline_mode<synchronous>, transform_indices = @transform_1, window_bounds = array<i64: 9, 32, 8>}, {pipeline_mode = #tpu.pipeline_mode<synchronous>, transform_indices = @transform_2, window_bounds = array<i64: 32, 1>}, {transform_indices = @transform_3, window_bounds = array<i64: 1, 32, 288>}]} {
    %c0 = arith.constant 0 : index
    %c0_0 = arith.constant 0 : index
    %c0_1 = arith.constant 0 : index
    %0 = vector.load %arg2[%c0, %c0_0, %c0_1] : memref<1x8x342xbf16, #tpu.memory_space<vmem>>, vector<1x8x342xbf16>
    %1 = vector.shape_cast %0 : vector<1x8x342xbf16> to vector<8x342xbf16>
    %cst = arith.constant 0.000000e+00 : f32
    %2 = vector.broadcast %cst : f32 to vector<32x288xf32>
    %3 = vector.extract_strided_slice %1 {offsets = [0, 0], sizes = [8, 288], strides = [1, 1]} : vector<8x342xbf16> to vector<8x288xbf16>
    %c0_2 = arith.constant 0 : index
    %c0_3 = arith.constant 0 : index
    %c0_4 = arith.constant 0 : index
    %4 = vector.load %arg3[%c0_2, %c0_3, %c0_4] : memref<9x32x8xbf16, #tpu.memory_space<vmem>>, vector<1x32x8xbf16>
    %5 = vector.shape_cast %4 : vector<1x32x8xbf16> to vector<32x8xbf16>
    %cst_5 = arith.constant dense<0.000000e+00> : vector<32x288xf32>
    %6 = tpu.matmul %5, %3, %cst_5 {dimension_numbers = #tpu.dot_dimension_numbers<[1], [0], [0], [1], [0, 0, 1, 1], [], []>} : vector<32x8xbf16>, vector<8x288xbf16>, vector<32x288xf32> -> vector<32x288xf32>
    %7 = arith.addf %2, %6 : vector<32x288xf32>
    %8 = vector.extract_strided_slice %1 {offsets = [0, 1], sizes = [8, 288], strides = [1, 1]} : vector<8x342xbf16> to vector<8x288xbf16>
    %c1 = arith.constant 1 : index
    %c0_6 = arith.constant 0 : index
    %c0_7 = arith.constant 0 : index
    %9 = vector.load %arg3[%c1, %c0_6, %c0_7] : memref<9x32x8xbf16, #tpu.memory_space<vmem>>, vector<1x32x8xbf16>
    %10 = vector.shape_cast %9 : vector<1x32x8xbf16> to vector<32x8xbf16>
    %cst_8 = arith.constant dense<0.000000e+00> : vector<32x288xf32>
    %11 = tpu.matmul %10, %8, %cst_8 {dimension_numbers = #tpu.dot_dimension_numbers<[1], [0], [0], [1], [0, 0, 1, 1], [], []>} : vector<32x8xbf16>, vector<8x288xbf16>, vector<32x288xf32> -> vector<32x288xf32>
    %12 = arith.addf %7, %11 : vector<32x288xf32>
    %13 = vector.extract_strided_slice %1 {offsets = [0, 2], sizes = [8, 288], strides = [1, 1]} : vector<8x342xbf16> to vector<8x288xbf16>
    %c2 = arith.constant 2 : index
    %c0_9 = arith.constant 0 : index
    %c0_10 = arith.constant 0 : index
    %14 = vector.load %arg3[%c2, %c0_9, %c0_10] : memref<9x32x8xbf16, #tpu.memory_space<vmem>>, vector<1x32x8xbf16>
    %15 = vector.shape_cast %14 : vector<1x32x8xbf16> to vector<32x8xbf16>
    %cst_11 = arith.constant dense<0.000000e+00> : vector<32x288xf32>
    %16 = tpu.matmul %15, %13, %cst_11 {dimension_numbers = #tpu.dot_dimension_numbers<[1], [0], [0], [1], [0, 0, 1, 1], [], []>} : vector<32x8xbf16>, vector<8x288xbf16>, vector<32x288xf32> -> vector<32x288xf32>
    %17 = arith.addf %12, %16 : vector<32x288xf32>
    %18 = vector.extract_strided_slice %1 {offsets = [0, 18], sizes = [8, 288], strides = [1, 1]} : vector<8x342xbf16> to vector<8x288xbf16>
    %c3 = arith.constant 3 : index
    %c0_12 = arith.constant 0 : index
    %c0_13 = arith.constant 0 : index
    %19 = vector.load %arg3[%c3, %c0_12, %c0_13] : memref<9x32x8xbf16, #tpu.memory_space<vmem>>, vector<1x32x8xbf16>
    %20 = vector.shape_cast %19 : vector<1x32x8xbf16> to vector<32x8xbf16>
    %cst_14 = arith.constant dense<0.000000e+00> : vector<32x288xf32>
    %21 = tpu.matmul %20, %18, %cst_14 {dimension_numbers = #tpu.dot_dimension_numbers<[1], [0], [0], [1], [0, 0, 1, 1], [], []>} : vector<32x8xbf16>, vector<8x288xbf16>, vector<32x288xf32> -> vector<32x288xf32>
    %22 = arith.addf %17, %21 : vector<32x288xf32>
    %23 = vector.extract_strided_slice %1 {offsets = [0, 19], sizes = [8, 288], strides = [1, 1]} : vector<8x342xbf16> to vector<8x288xbf16>
    %c4 = arith.constant 4 : index
    %c0_15 = arith.constant 0 : index
    %c0_16 = arith.constant 0 : index
    %24 = vector.load %arg3[%c4, %c0_15, %c0_16] : memref<9x32x8xbf16, #tpu.memory_space<vmem>>, vector<1x32x8xbf16>
    %25 = vector.shape_cast %24 : vector<1x32x8xbf16> to vector<32x8xbf16>
    %cst_17 = arith.constant dense<0.000000e+00> : vector<32x288xf32>
    %26 = tpu.matmul %25, %23, %cst_17 {dimension_numbers = #tpu.dot_dimension_numbers<[1], [0], [0], [1], [0, 0, 1, 1], [], []>} : vector<32x8xbf16>, vector<8x288xbf16>, vector<32x288xf32> -> vector<32x288xf32>
    %27 = arith.addf %22, %26 : vector<32x288xf32>
    %28 = vector.extract_strided_slice %1 {offsets = [0, 20], sizes = [8, 288], strides = [1, 1]} : vector<8x342xbf16> to vector<8x288xbf16>
    %c5 = arith.constant 5 : index
    %c0_18 = arith.constant 0 : index
    %c0_19 = arith.constant 0 : index
    %29 = vector.load %arg3[%c5, %c0_18, %c0_19] : memref<9x32x8xbf16, #tpu.memory_space<vmem>>, vector<1x32x8xbf16>
    %30 = vector.shape_cast %29 : vector<1x32x8xbf16> to vector<32x8xbf16>
    %cst_20 = arith.constant dense<0.000000e+00> : vector<32x288xf32>
    %31 = tpu.matmul %30, %28, %cst_20 {dimension_numbers = #tpu.dot_dimension_numbers<[1], [0], [0], [1], [0, 0, 1, 1], [], []>} : vector<32x8xbf16>, vector<8x288xbf16>, vector<32x288xf32> -> vector<32x288xf32>
    %32 = arith.addf %27, %31 : vector<32x288xf32>
    %33 = vector.extract_strided_slice %1 {offsets = [0, 36], sizes = [8, 288], strides = [1, 1]} : vector<8x342xbf16> to vector<8x288xbf16>
    %c6 = arith.constant 6 : index
    %c0_21 = arith.constant 0 : index
    %c0_22 = arith.constant 0 : index
    %34 = vector.load %arg3[%c6, %c0_21, %c0_22] : memref<9x32x8xbf16, #tpu.memory_space<vmem>>, vector<1x32x8xbf16>
    %35 = vector.shape_cast %34 : vector<1x32x8xbf16> to vector<32x8xbf16>
    %cst_23 = arith.constant dense<0.000000e+00> : vector<32x288xf32>
    %36 = tpu.matmul %35, %33, %cst_23 {dimension_numbers = #tpu.dot_dimension_numbers<[1], [0], [0], [1], [0, 0, 1, 1], [], []>} : vector<32x8xbf16>, vector<8x288xbf16>, vector<32x288xf32> -> vector<32x288xf32>
    %37 = arith.addf %32, %36 : vector<32x288xf32>
    %38 = vector.extract_strided_slice %1 {offsets = [0, 37], sizes = [8, 288], strides = [1, 1]} : vector<8x342xbf16> to vector<8x288xbf16>
    %c7 = arith.constant 7 : index
    %c0_24 = arith.constant 0 : index
    %c0_25 = arith.constant 0 : index
    %39 = vector.load %arg3[%c7, %c0_24, %c0_25] : memref<9x32x8xbf16, #tpu.memory_space<vmem>>, vector<1x32x8xbf16>
    %40 = vector.shape_cast %39 : vector<1x32x8xbf16> to vector<32x8xbf16>
    %cst_26 = arith.constant dense<0.000000e+00> : vector<32x288xf32>
    %41 = tpu.matmul %40, %38, %cst_26 {dimension_numbers = #tpu.dot_dimension_numbers<[1], [0], [0], [1], [0, 0, 1, 1], [], []>} : vector<32x8xbf16>, vector<8x288xbf16>, vector<32x288xf32> -> vector<32x288xf32>
    %42 = arith.addf %37, %41 : vector<32x288xf32>
    %43 = vector.extract_strided_slice %1 {offsets = [0, 38], sizes = [8, 288], strides = [1, 1]} : vector<8x342xbf16> to vector<8x288xbf16>
    %c8 = arith.constant 8 : index
    %c0_27 = arith.constant 0 : index
    %c0_28 = arith.constant 0 : index
    %44 = vector.load %arg3[%c8, %c0_27, %c0_28] : memref<9x32x8xbf16, #tpu.memory_space<vmem>>, vector<1x32x8xbf16>
    %45 = vector.shape_cast %44 : vector<1x32x8xbf16> to vector<32x8xbf16>
    %cst_29 = arith.constant dense<0.000000e+00> : vector<32x288xf32>
    %46 = tpu.matmul %45, %43, %cst_29 {dimension_numbers = #tpu.dot_dimension_numbers<[1], [0], [0], [1], [0, 0, 1, 1], [], []>} : vector<32x8xbf16>, vector<8x288xbf16>, vector<32x288xf32> -> vector<32x288xf32>
    %47 = arith.addf %42, %46 : vector<32x288xf32>
    %c0_30 = arith.constant 0 : index
    %c0_31 = arith.constant 0 : index
    %48 = vector.load %arg4[%c0_30, %c0_31] : memref<32x1xf32, #tpu.memory_space<vmem>>, vector<32x1xf32>
    %49 = vector.broadcast %48 : vector<32x1xf32> to vector<32x288xf32>
    %50 = arith.addf %47, %49 : vector<32x288xf32>
    %cst_32 = arith.constant 0.000000e+00 : f32
    %51 = vector.broadcast %cst_32 : f32 to vector<32x288xf32>
    %52 = arith.subf %51, %50 : vector<32x288xf32>
    %53 = math.exp %52 : vector<32x288xf32>
    %cst_33 = arith.constant 1.000000e+00 : f32
    %54 = vector.broadcast %cst_33 : f32 to vector<32x288xf32>
    %55 = arith.addf %54, %53 : vector<32x288xf32>
    %56 = tpu.reciprocal %55 {approx = true} : vector<32x288xf32> -> vector<32x288xf32>
    %57 = arith.truncf %56 : vector<32x288xf32> to vector<32x288xbf16>
    %c0_34 = arith.constant 0 : index
    %c0_35 = arith.constant 0 : index
    %c0_36 = arith.constant 0 : index
    %58 = vector.load %arg5[%c0_34, %c0_35, %c0_36] : memref<1x32x288xbf16, #tpu.memory_space<vmem>>, vector<1x32x288xbf16>
    %59 = vector.shape_cast %58 : vector<1x32x288xbf16> to vector<32x288xbf16>
    %60 = vector.shape_cast %57 : vector<32x288xbf16> to vector<1x32x288xbf16>
    tpu.vector_store %arg5[%c0_34, %c0_35, %c0_36], %60 {strides = array<i32>} : memref<1x32x288xbf16, #tpu.memory_space<vmem>>, vector<1x32x288xbf16>,
    return
  }
  func.func @transform_0(%arg0: i32, %arg1: i32) -> (i32, i32, i32) {
    %c0_i32 = arith.constant 0 : i32
    %c0_i32_0 = arith.constant 0 : i32
    %c0_i32_1 = arith.constant 0 : i32
    return %arg0, %c0_i32, %c0_i32_0 : i32, i32, i32
  }
  func.func @transform_1(%arg0: i32, %arg1: i32) -> (i32, i32, i32) {
    %c0_i32 = arith.constant 0 : i32
    %c0_i32_0 = arith.constant 0 : i32
    %c0_i32_1 = arith.constant 0 : i32
    %c0_i32_2 = arith.constant 0 : i32
    return %c0_i32, %c0_i32_0, %c0_i32_1 : i32, i32, i32
  }
  func.func @transform_2(%arg0: i32, %arg1: i32) -> (i32, i32) {
    %c0_i32 = arith.constant 0 : i32
    %c0_i32_0 = arith.constant 0 : i32
    %c0_i32_1 = arith.constant 0 : i32
    return %c0_i32, %c0_i32_0 : i32, i32
  }
  func.func @transform_3(%arg0: i32, %arg1: i32) -> (i32, i32, i32) {
    %c0_i32 = arith.constant 0 : i32
    %c0_i32_0 = arith.constant 0 : i32
    return %arg0, %c0_i32, %arg1 : i32, i32, i32
  }
}

</mosaic_0001>

<bundles_post_ra>
// kernel: filter_nn_forward.1
= control target key start
LH: loop header
LB: loop body
LE: loop exit
PB: predicated region body
PF: predicated region fallthrough
CT: control target
= control target key end

     0   :  { %s1664_s12 = smov 0   ;;  %s1666_s13 = smov 0   ;;  %s1929_s0 = inlined_call_operand.vmem [shape: bf16[2,8,342], index: 0, kind: input, shape index: {}]   ;;  %s1930_s1 = inlined_call_operand.vmem [shape: bf16[9,32,8], index: 1, kind: input, shape index: {}]   ;;  %s1931_s2 = inlined_call_operand.vmem [shape: f32[32,1], index: 2, kind: input, shape index: {}]   ;;  %s1932_s3 = inlined_call_operand.vmem [shape: bf16[2,32,288], index: 3, kind: output, shape index: {}]  }
   0x1   :  { %s1668_s14 = smov 0  }
   0x2 LB: > { %s25_s15 = sadd.s32 1, %s1629_s13  ;;  %p1343_p0 = scmp.ge.s32.totalorder %s1633_s14, 1  ;;  %s1633_s14 = sphi %s1668_s14, %s13_s14   ;;  %s1629_s13 = sphi %s1666_s13, %s1934_s13   ;;  %s1625_s12 = sphi %s1664_s12, %s1933_s12  }
   0x3   : > { %p27_p1 = scmp.ge.s32.totalorder %s25_s15, 2  ;;  %p151_p2 = scmp.lt.s32.totalorder %s1633_s14, 3 }
   0x5   : > { %s1936_s15 = smov (%p27_p1, %s25_s15), 0  ;;  %p152_p3 = pnand %p1343_p0, %p151_p2 }
   0x6   : > { %p179_p4 = scmp.lt.s32.totalorder (!%p152_p3), %s1625_s12, 1  ;;  %s1635_s20 = smov (!%p152_p3), 127  }
   0x7   : > { %155 = sbr.rel (%p152_p3) target bundleno = 519 (0x207), region = 32  ;;  %s1636_s21 = smov (!%p152_p3), 126  }
   0x8   : > { %s1637_s22 = smov (!%p152_p3), 110   ;;  %s1638_s23 = smov (!%p152_p3), 109  }
   0x9   : > { %s1639_s24 = smov (!%p152_p3), 108   ;;  %s1640_s25 = smov (!%p152_p3), 92  }
   0xa   : > { %s1641_s26 = smov (!%p152_p3), 91   ;;  %s1642_s27 = smov (!%p152_p3), 90  }
   0xc   : > { %s1938_s12 = smov (!%p179_p4, %s1625_s12), 1  ;;  %vm240_vm0 = vcmask 1043456   ;;  %v1508_v12 = vld [vmem:[%s1930_s1 + $0x10] sm:$0xff]  ;;  %vm233_vm1 = vcmask 64512   ;;  %vm410_vm2 = vcmask 1031168   ;;  %vm230_vm3 = vcmask 1039360  }
   0xd   : > { %s1525_s16 = smul.u32 12, %s1938_s12  ;;  %v1509_v24 = vld [vmem:[%s1930_s1 + $0x18] sm:$0xff]  ;;  %vm518_vm4 = vcmask 900096   ;;  %v1506_v36 = vld [vmem:[%s1930_s1] sm:$0xff]  ;;  %vm626_vm5 = vcmask 891904   ;;  %v1507_v42 = vld [vmem:[%s1930_s1 + $0x8] sm:$0xff] }
   0xe   : > { %v1510_v38 = vld [vmem:[%s1930_s1 + $0x20] sm:$0xff]  ;;  %v1511_v47 = vld [vmem:[%s1930_s1 + $0x28] sm:$0xff]  ;;  %vm734_vm6 = vcmask 883712   ;;  %v1512_v52 = vld [vmem:[%s1930_s1 + $0x30] sm:$0xff]  ;;  %vm842_vm7 = vcmask 752640   ;;  %vm950_vm8 = vcmask 744448  }
   0xf   : > { %s183_s19 = scalar_lea.vmem %s1929_s0, %s1525_s16  ;;  %v1513_v62 = vld [vmem:[%s1930_s1 + $0x38] sm:$0xff]  ;;  %vm1058_vm9 = vcmask 736256   ;;  %vm1250_vm10 = vcmask 257024  }
  0x10   : > { %v196_v0 = vld [vmem:[%s183_s19 + $0x8] sm:$0xf]  ;;  %v195_v1 = vld [vmem:[%s183_s19] sm:$0xff] }
  0x11   : > { %v220_v2 = vunpack.c.l.b16 %v196_v0  ;;  %v218_v3 = vunpack.c.l.b16 %v195_v1  ;;  %v219_v4 = vunpack.c.h.b16 %v195_v1  ;;  %v1514_v1 = vld [vmem:[%s1930_s1 + $0x40] sm:$0xff] }
  0x13   : > { %v223_v5 = vpack.c.b16 %v220_v2, %v220_v2  ;;  %v221_v6 = vpack.c.b16 %v218_v3, %v218_v3  ;;  %v1688_v7 = vpack.c.b16 %v219_v4, %v219_v4 }
  0x15   : > { %228 = vrot.lane.b32.xlu0 %v223_v5, %s1635_s20  ;;  %224 = vrot.lane.b32.xlu1 %v221_v6, %s1635_s20  ;;  %v324_v16 = vsel %vm240_vm0, %v221_v6, 0  ;;  %v330_v25 = vsel %vm240_vm0, %v223_v5, 0  ;;  %v327_v27 = vsel %vm240_vm0, %v1688_v7, 0 }
  0x16   : > { %406 = vrot.lane.b32.xlu2 %v1688_v7, %s1636_s21 }
  0x1d   : > { %226 = vrot.lane.b32.xlu0 %v1688_v7, %s1635_s20  ;;  %404 = vrot.lane.b32.xlu1 %v221_v6, %s1636_s21 }
  0x1e   : > { %408 = vrot.lane.b32.xlu2 %v223_v5, %s1636_s21 }
  0x25   : > { %514 = vrot.lane.b32.xlu0 %v1688_v7, %s1637_s22  ;;  %516 = vrot.lane.b32.xlu1 %v223_v5, %s1637_s22 }
  0x26   : > { %512 = vrot.lane.b32.xlu2 %v221_v6, %s1637_s22 }
  0x2d   : > { %624 = vrot.lane.b32.xlu0 %v223_v5, %s1638_s23  ;;  %620 = vrot.lane.b32.xlu1 %v221_v6, %s1638_s23 }
  0x2e   : > { %622 = vrot.lane.b32.xlu2 %v1688_v7, %s1638_s23 }
  0x35   : > { %730 = vrot.lane.b32.xlu1 %v1688_v7, %s1639_s24  ;;  %728 = vrot.lane.b32.xlu0 %v221_v6, %s1639_s24 }
  0x36   : > { %836 = vrot.lane.b32.xlu2 %v221_v6, %s1640_s25 }
  0x3d   : > { %732 = vrot.lane.b32.xlu1 %v223_v5, %s1639_s24  ;;  %838 = vrot.lane.b32.xlu0 %v1688_v7, %s1640_s25 }
  0x3e   : > { %840 = vrot.lane.b32.xlu2 %v223_v5, %s1640_s25 }
  0x45   : > { %946 = vrot.lane.b32.xlu0 %v1688_v7, %s1641_s26  ;;  %948 = vrot.lane.b32.xlu1 %v223_v5, %s1641_s26 }
  0x46   : > { %944 = vrot.lane.b32.xlu2 %v221_v6, %s1641_s26  ;;  %s1526_s26 = smul.u32 48, %s1938_s12 }
  0x48   : > { %s1905_s28 = scalar_lea.vmem %s1932_s3, %s1526_s26 }
  0x4d   : > { %1056 = vrot.lane.b32.xlu0 %v223_v5, %s1642_s27  ;;  %1052 = vrot.lane.b32.xlu1 %v221_v6, %s1642_s27 }
  0x4e   : > { %1054 = vrot.lane.b32.xlu2 %v1688_v7, %s1642_s27  ;;  %v1515_v7 = vld [vmem:[%s1930_s1 + $0x48] sm:$0xff] }
  0x70   : > { %v407_v8 = vpop.permute.xlu2 %406 }
  0x78   : > { %v409_v13 = vpop.permute.xlu2 %408 }
  0x79   : > { %v412_v17 = vsel %vm410_vm2, %v407_v8, %v409_v13  ;;  %v426_v28 = vsel %vm240_vm0, %v409_v13, 0 }
  0x7a   : > { %v423_v26 = vsel %vm240_vm0, %v412_v17, 0 }
  0x80   : > { %v513_v29 = vpop.permute.xlu2 %512 }
  0x87   : > { %v229_v9 = vpop.permute.xlu0 %228  ;;  %v225_v10 = vpop.permute.xlu1 %224 }
  0x88   : > { %v248_v11 = vsel %vm240_vm0, %v229_v9, 0  ;;  %v623_v41 = vpop.permute.xlu2 %622 }
  0x89   : > { %295 = vmatpush.bf16.msra.mxu2 %v248_v11 }
  0x8c   : > { %1362 = vmatmul.msk.bf16.vlgmr.msra.gmra.mxu2 %vm233_vm1, %v1508_v12 }
  0x8f   : > { %v227_v14 = vpop.permute.xlu0 %226  ;;  %v405_v15 = vpop.permute.xlu1 %404 }
  0x90   : > { %v231_v18 = vsel %vm230_vm3, %v225_v10, %v227_v14  ;;  %v232_v19 = vsel %vm230_vm3, %v227_v14, %v229_v9  ;;  %v411_v20 = vsel %vm410_vm2, %v405_v15, %v407_v8  ;;  %v837_v54 = vpop.permute.xlu2 %836  ;;  %v1518_v14 = vld [vmem:[%s1930_s1 + $0x60] sm:$0xff] }
  0x91   : > { %v242_v21 = vsel %vm240_vm0, %v231_v18, 0  ;;  %v245_v22 = vsel %vm240_vm0, %v232_v19, 0  ;;  %v420_v23 = vsel %vm240_vm0, %v411_v20, 0  ;;  %v1517_v18 = vld [vmem:[%s1930_s1 + $0x58] sm:$0xff] }
  0x92   : > { %257 = vmatpush.bf16.msra.mxu0 %v242_v21  ;;  %1524 = vmatpush.bf16.msra.mxu3 %v242_v21 }
  0x93   : > { %276 = vmatpush.bf16.msra.mxu1 %v245_v22  ;;  %435 = vmatpush.bf16.msrb.mxu2 %v420_v23 }
  0x95   : > { %1358 = vmatmul.msk.bf16.vlgmr.msra.gmra.mxu0 %vm233_vm1, %v1508_v12  ;;  %1359 = vmatmul.msk.bf16.vlgmr.msra.gmra.mxu3 %vm233_vm1, %v1509_v24 }
  0x96   : > { %339 = vmatpush.bf16.msrb.mxu3 %v324_v16  ;;  %1360 = vmatmul.msk.bf16.vlgmr.msra.gmra.mxu1 %vm233_vm1, %v1508_v12  ;;  %v1516_v12 = vld [vmem:[%s1930_s1 + $0x50] sm:$0xff] }
  0x97   : > { %377 = vmatpush.bf16.msrb.mxu1 %v330_v25  ;;  %358 = vmatpush.bf16.msrb.mxu0 %v327_v27  ;;  %v515_v30 = vpop.permute.xlu0 %514  ;;  %v517_v31 = vpop.permute.xlu1 %516 }
  0x98   : > { %v519_v32 = vsel %vm518_vm4, %v513_v29, %v515_v30  ;;  %v520_v33 = vsel %vm518_vm4, %v515_v30, %v517_v31  ;;  %v534_v37 = vsel %vm240_vm0, %v517_v31, 0  ;;  %v841_v63 = vpop.permute.xlu2 %840 }
  0x99   : > { %v528_v34 = vsel %vm240_vm0, %v519_v32, 0  ;;  %v531_v35 = vsel %vm240_vm0, %v520_v33, 0  ;;  %v858_v3 = vsel %vm240_vm0, %v841_v63, 0 }
  0x9a   : > { %454 = vmatpush.bf16.msra.mxu3 %v423_v26  ;;  %562 = vmatpush.bf16.msra.mxu2 %v531_v35 }
  0x9b   : > { %473 = vmatpush.bf16.msra.mxu0 %v426_v28  ;;  %543 = vmatpush.bf16.msra.mxu1 %v528_v34  ;;  %v1519_v28 = vld [vmem:[%s1930_s1 + $0x68] sm:$0xff] }
  0x9c   : > { %1363 = vmatmul.msk.bf16.gmra.mxu2 %vm233_vm1, %v1509_v24 }
  0x9f   : > { %v625_v39 = vpop.permute.xlu0 %624  ;;  %v621_v45 = vpop.permute.xlu1 %620 }
  0xa0   : > { %v642_v40 = vsel %vm240_vm0, %v625_v39, 0  ;;  %v628_v43 = vsel %vm626_vm5, %v623_v41, %v625_v39  ;;  %v627_v46 = vsel %vm626_vm5, %v621_v45, %v623_v41  ;;  %v945_v5 = vpop.permute.xlu2 %944  ;;  %v1520_v39 = vld [vmem:[%s1930_s1 + $0x70] sm:$0xff] }
  0xa1   : > { %v639_v44 = vsel %vm240_vm0, %v628_v43, 0  ;;  %v636_v48 = vsel %vm240_vm0, %v627_v46, 0 }
  0xa5   : > { %1372 = vmatmul.msk.bf16.vlgmr.msrb.gmra.mxu3 %vm233_vm1, %v1506_v36  ;;  %1374 = vmatmul.msk.bf16.vlgmr.msrb.gmra.mxu0 %vm233_vm1, %v1506_v36 }
  0xa6   : > { %1361 = vmatmul.msk.bf16.gmra.mxu1 %vm233_vm1, %v1509_v24  ;;  %581 = vmatpush.bf16.msrb.mxu3 %v534_v37 }
  0xa7   : > { %651 = vmatpush.bf16.msrb.mxu0 %v636_v48  ;;  %v731_v49 = vpop.permute.xlu1 %730  ;;  %v729_v50 = vpop.permute.xlu0 %728  ;;  %v1145_v48 = vld [vmem:[%s1931_s2] sm:$0xff] }
  0xa8   : > { %v735_v51 = vsel %vm734_vm6, %v729_v50, %v731_v49  ;;  %v1055_v17 = vpop.permute.xlu2 %1054  ;;  %v1643_v50 = vmov 0  }
  0xa9   : > { %v744_v53 = vsel %vm240_vm0, %v735_v51, 0  ;;  %1560 = vset.pattern.permute.xlu0 %v1643_v50  ;;  %1561 = vset.pattern.permute.xlu1 %v1643_v50 }
  0xaa   : > { %1151 = vperm.xlu0 %1560, %v1145_v48   ;;  %1562 = vset.pattern.permute.xlu2 %v1643_v50 }
  0xac   : > { %1390 = vmatmul.msk.bf16.vlgmr.msrb.gmra.mxu2 %vm233_vm1, %v1510_v38 }
  0xad   : > { %689 = vmatpush.bf16.msrb.mxu2 %v642_v40 }
  0xaf   : > { %v733_v55 = vpop.permute.xlu1 %732  ;;  %v839_v56 = vpop.permute.xlu0 %838 }
  0xb0   : > { %v736_v57 = vsel %vm734_vm6, %v731_v49, %v733_v55  ;;  %v843_v58 = vsel %vm842_vm7, %v837_v54, %v839_v56  ;;  %v750_v61 = vsel %vm240_vm0, %v733_v55, 0  ;;  %v844_v0 = vsel %vm842_vm7, %v839_v56, %v841_v63 }
  0xb1   : > { %v747_v59 = vsel %vm240_vm0, %v736_v57, 0  ;;  %v852_v60 = vsel %vm240_vm0, %v843_v58, 0  ;;  %v855_v2 = vsel %vm240_vm0, %v844_v0, 0  ;;  %v1521_v57 = vld [vmem:[%s1930_s1 + $0x78] sm:$0xff] }
  0xb5   : > { %1373 = vmatmul.msk.bf16.gmra.mxu3 %vm233_vm1, %v1507_v42  ;;  %1375 = vmatmul.msk.bf16.gmra.mxu0 %vm233_vm1, %v1507_v42 }
  0xb6   : > { %1376 = vmatmul.msk.bf16.vlgmr.msrb.gmra.mxu1 %vm233_vm1, %v1506_v36 }
  0xb7   : > { %670 = vmatpush.bf16.msrb.mxu1 %v639_v44  ;;  %v947_v4 = vpop.permute.xlu0 %946  ;;  %v949_v6 = vpop.permute.xlu1 %948 }
  0xb8   : > { %v951_v8 = vsel %vm950_vm8, %v945_v5, %v947_v4  ;;  %v952_v9 = vsel %vm950_vm8, %v947_v4, %v949_v6  ;;  %v966_v13 = vsel %vm240_vm0, %v949_v6, 0  ;;  %v1522_v4 = vld [vmem:[%s1930_s1 + $0x80] sm:$0xff] }
  0xb9   : > { %v963_v10 = vsel %vm240_vm0, %v952_v9, 0  ;;  %v960_v11 = vsel %vm240_vm0, %v951_v8, 0 }
  0xbc   : > { %1391 = vmatmul.msk.bf16.gmra.mxu2 %vm233_vm1, %v1511_v47 }
  0xbf   : > { %v1057_v16 = vpop.permute.xlu0 %1056  ;;  %v1053_v24 = vpop.permute.xlu1 %1052 }
  0xc0   : > { %v1074_v19 = vsel %vm240_vm0, %v1057_v16, 0  ;;  %v1060_v20 = vsel %vm1058_vm9, %v1055_v17, %v1057_v16  ;;  %v1059_v26 = vsel %vm1058_vm9, %v1053_v24, %v1055_v17 }
  0xc1   : > { %v1071_v23 = vsel %vm240_vm0, %v1060_v20, 0  ;;  %v1068_v29 = vsel %vm240_vm0, %v1059_v26, 0 }
  0xc5   : > { %1392 = vmatmul.msk.bf16.vlgmr.msra.gmra.mxu3 %vm233_vm1, %v1510_v38  ;;  %1394 = vmatmul.msk.bf16.vlgmr.msra.gmra.mxu0 %vm233_vm1, %v1510_v38 }
  0xc6   : > { %1377 = vmatmul.msk.bf16.gmra.mxu1 %vm233_vm1, %v1507_v42  ;;  %759 = vmatpush.bf16.msra.mxu3 %v744_v53 }
  0xc7   : > { %778 = vmatpush.bf16.msra.mxu0 %v747_v59 }
  0xcc   : > { %1410 = vmatmul.msk.bf16.vlgmr.msra.gmra.mxu2 %vm233_vm1, %v1512_v52 }
  0xcd   : > { %867 = vmatpush.bf16.msra.mxu2 %v852_v60  ;;  %v1146_v60 = vld [vmem:[%s1931_s2 + $0x8] sm:$0xff] }
  0xce   : > { %1156 = vperm.xlu1 %1561, %v1146_v60  }
  0xd5   : > { %1395 = vmatmul.msk.bf16.gmra.mxu0 %vm233_vm1, %v1511_v47  ;;  %1393 = vmatmul.msk.bf16.gmra.mxu3 %vm233_vm1, %v1511_v47 }
  0xd6   : > { %1408 = vmatmul.msk.bf16.vlgmr.msra.gmra.mxu1 %vm233_vm1, %v1512_v52 }
  0xd7   : > { %797 = vmatpush.bf16.msra.mxu1 %v750_v61 }
  0xdc   : > { %1411 = vmatmul.msk.bf16.gmra.mxu2 %vm233_vm1, %v1513_v62 }
  0xe5   : > { %1426 = vmatmul.msk.bf16.vlgmr.msrb.gmra.mxu0 %vm233_vm1, %v1514_v1  ;;  %1412 = vmatmul.msk.bf16.vlgmr.msrb.gmra.mxu3 %vm233_vm1, %v1512_v52 }
  0xe6   : > { %1409 = vmatmul.msk.bf16.gmra.mxu1 %vm233_vm1, %v1513_v62  ;;  %886 = vmatpush.bf16.msrb.mxu3 %v855_v2 }
  0xe7   : > { %905 = vmatpush.bf16.msrb.mxu0 %v858_v3 }
  0xec   : > { %1430 = vmatmul.msk.bf16.vlgmr.msrb.gmra.mxu2 %vm233_vm1, %v1514_v1 }
  0xed   : > { %994 = vmatpush.bf16.msrb.mxu2 %v963_v10 }
  0xf5   : > { %1413 = vmatmul.msk.bf16.gmra.mxu3 %vm233_vm1, %v1513_v62  ;;  %1427 = vmatmul.msk.bf16.gmra.mxu0 %vm233_vm1, %v1515_v7 }
  0xf6   : > { %1428 = vmatmul.msk.bf16.vlgmr.msrb.gmra.mxu1 %vm233_vm1, %v1514_v1 }
  0xf7   : > { %975 = vmatpush.bf16.msrb.mxu1 %v960_v11 }
  0xfc   : > { %1431 = vmatmul.msk.bf16.gmra.mxu2 %vm233_vm1, %v1515_v7 }
 0x105   : > { %1444 = vmatmul.msk.bf16.vlgmr.msra.gmra.mxu3 %vm233_vm1, %v1516_v12  ;;  %1446 = vmatmul.msk.bf16.vlgmr.msra.gmra.mxu0 %vm233_vm1, %v1516_v12 }
 0x106   : > { %1429 = vmatmul.msk.bf16.gmra.mxu1 %vm233_vm1, %v1515_v7  ;;  %1013 = vmatpush.bf16.msra.mxu3 %v966_v13 }
 0x107   : > { %1083 = vmatpush.bf16.msra.mxu0 %v1068_v29 }
 0x10c   : > { %1462 = vmatmul.msk.bf16.vlgmr.msra.gmra.mxu2 %vm233_vm1, %v1518_v14 }
 0x10d   : > { %1121 = vmatpush.bf16.msra.mxu2 %v1074_v19 }
 0x10f   : > { %v297_v15 = vpop.f32.mrf.mxu2 }
 0x112   : > { %v259_v21 = vpop.f32.mrf.mxu0 }
 0x113   : > { %v278_v22 = vpop.f32.mrf.mxu1 }
 0x115   : > { %1445 = vmatmul.msk.bf16.gmra.mxu3 %vm233_vm1, %v1517_v18  ;;  %1447 = vmatmul.msk.bf16.gmra.mxu0 %vm233_vm1, %v1517_v18 }
 0x116   : > { %1448 = vmatmul.msk.bf16.vlgmr.msra.gmra.mxu1 %vm233_vm1, %v1516_v12 }
 0x117   : > { %v299_v25 = vpop.f32.mrf.mxu2  ;;  %1102 = vmatpush.bf16.msra.mxu1 %v1071_v23 }
 0x118   : > { %v264_v27 = vpop.f32.mrf.mxu3 }
 0x11a   : > { %v261_v30 = vpop.f32.mrf.mxu0 }
 0x11b   : > { %v280_v31 = vpop.f32.mrf.mxu1 }
 0x11c   : > { %1463 = vmatmul.msk.bf16.gmra.mxu2 %vm233_vm1, %v1519_v28 }
 0x11f   : > { %v302_v32 = vpop.f32.mrf.mxu2 }
 0x120   : > { %v266_v33 = vpop.f32.mrf.mxu3 }
 0x122   : > { %v360_v34 = vpop.f32.mrf.mxu0 }
 0x123   : > { %v283_v35 = vpop.f32.mrf.mxu1  ;;  %v361_v36 = vadd.f32 %v360_v34, %v278_v22  ;;  %v1523_v22 = vld [vmem:[%s1930_s1 + $0x88] sm:$0xff] }
 0x125   : > { %1464 = vmatmul.msk.bf16.vlgmr.msrb.gmra.mxu3 %vm233_vm1, %v1518_v14  ;;  %1466 = vmatmul.msk.bf16.vlgmr.msrb.gmra.mxu0 %vm233_vm1, %v1518_v14  ;;  %v1148_v14 = vld [vmem:[%s1931_s2 + $0x18] sm:$0xff] }
 0x126   : > { %1449 = vmatmul.msk.bf16.gmra.mxu1 %vm233_vm1, %v1517_v18  ;;  %1166 = vperm.xlu1 %1561, %v1148_v14  }
 0x127   : > { %v304_v37 = vpop.f32.mrf.mxu2 }
 0x128   : > { %v341_v38 = vpop.f32.mrf.mxu3 }
 0x129   : > { %v342_v40 = vadd.f32 %v341_v38, %v259_v21 }
 0x12a   : > { %v362_v41 = vpop.f32.mrf.mxu0 }
 0x12b   : > { %v285_v42 = vpop.f32.mrf.mxu1  ;;  %v363_v43 = vadd.f32 %v362_v41, %v280_v31  ;;  %v1147_v31 = vld [vmem:[%s1931_s2 + $0x10] sm:$0xff] }
 0x12c   : > { %1482 = vmatmul.msk.bf16.vlgmr.msrb.gmra.mxu2 %vm233_vm1, %v1520_v39  ;;  %1161 = vperm.xlu2 %1562, %v1147_v31  }
 0x12f   : > { %v437_v44 = vpop.f32.mrf.mxu2 }
 0x130   : > { %v485_v45 = vadd.f32 %v437_v44, %v342_v40  ;;  %v343_v46 = vpop.f32.mrf.mxu3 }
 0x131   : > { %v344_v47 = vadd.f32 %v343_v46, %v261_v30 }
 0x132   : > { %v365_v49 = vpop.f32.mrf.mxu0 }
 0x133   : > { %v366_v51 = vadd.f32 %v365_v49, %v283_v35  ;;  %v379_v52 = vpop.f32.mrf.mxu1 }
 0x134   : > { %v380_v53 = vadd.f32 %v379_v52, %v297_v15 }
 0x135   : > { %1467 = vmatmul.msk.bf16.gmra.mxu0 %vm233_vm1, %v1519_v28  ;;  %1465 = vmatmul.msk.bf16.gmra.mxu3 %vm233_vm1, %v1519_v28 }
 0x136   : > { %1480 = vmatmul.msk.bf16.vlgmr.msrb.gmra.mxu1 %vm233_vm1, %v1520_v39 }
 0x137   : > { %v439_v54 = vpop.f32.mrf.mxu2 }
 0x138   : > { %v488_v55 = vadd.f32 %v439_v54, %v344_v47  ;;  %v346_v56 = vpop.f32.mrf.mxu3 }
 0x139   : > { %v347_v58 = vadd.f32 %v346_v56, %v264_v27 }
 0x13a   : > { %v367_v59 = vpop.f32.mrf.mxu0 }
 0x13b   : > { %v368_v61 = vadd.f32 %v367_v59, %v285_v42  ;;  %v381_v62 = vpop.f32.mrf.mxu1 }
 0x13c   : > { %v382_v63 = vadd.f32 %v381_v62, %v299_v25  ;;  %1483 = vmatmul.msk.bf16.gmra.mxu2 %vm233_vm1, %v1521_v57 }
 0x13f   : > { %v442_v0 = vpop.f32.mrf.mxu2 }
 0x140   : > { %v491_v1 = vadd.f32 %v442_v0, %v347_v58  ;;  %v348_v2 = vpop.f32.mrf.mxu3 }
 0x141   : > { %v349_v3 = vadd.f32 %v348_v2, %v266_v33 }
 0x142   : > { %v475_v5 = vpop.f32.mrf.mxu0 }
 0x143   : > { %v384_v6 = vpop.f32.mrf.mxu1  ;;  %v487_v7 = vadd.f32 %v475_v5, %v380_v53 }
 0x144   : > { %v385_v8 = vadd.f32 %v384_v6, %v302_v32 }
 0x145   : > { %1484 = vmatmul.msk.bf16.vlgmr.msra.gmra.mxu3 %vm233_vm1, %v1520_v39  ;;  %1498 = vmatmul.msk.bf16.vlgmr.msra.gmra.mxu0 %vm233_vm1, %v1522_v4 }
 0x146   : > { %1481 = vmatmul.msk.bf16.gmra.mxu1 %vm233_vm1, %v1521_v57 }
 0x147   : > { %v444_v9 = vpop.f32.mrf.mxu2 }
 0x148   : > { %v494_v10 = vadd.f32 %v444_v9, %v349_v3  ;;  %v456_v11 = vpop.f32.mrf.mxu3 }
 0x149   : > { %v486_v12 = vadd.f32 %v456_v11, %v361_v36 }
 0x14a   : > { %v477_v13 = vpop.f32.mrf.mxu0 }
 0x14b   : > { %v386_v15 = vpop.f32.mrf.mxu1  ;;  %v490_v16 = vadd.f32 %v477_v13, %v382_v63 }
 0x14c   : > { %v387_v17 = vadd.f32 %v386_v15, %v304_v37  ;;  %1502 = vmatmul.msk.bf16.vlgmr.msra.gmra.mxu2 %vm233_vm1, %v1522_v4 }
 0x14f   : > { %v564_v18 = vpop.f32.mrf.mxu2 }
 0x150   : > { %v594_v19 = vadd.f32 %v564_v18, %v486_v12  ;;  %v458_v20 = vpop.f32.mrf.mxu3 }
 0x151   : > { %v489_v21 = vadd.f32 %v458_v20, %v363_v43 }
 0x152   : > { %v480_v23 = vpop.f32.mrf.mxu0 }
 0x153   : > { %v493_v24 = vadd.f32 %v480_v23, %v385_v8  ;;  %v545_v25 = vpop.f32.mrf.mxu1 }
 0x154   : > { %v593_v26 = vadd.f32 %v545_v25, %v485_v45 }
 0x155   : > { %1485 = vmatmul.msk.bf16.gmra.mxu3 %vm233_vm1, %v1521_v57  ;;  %1499 = vmatmul.msk.bf16.gmra.mxu0 %vm233_vm1, %v1523_v22 }
 0x156   : > { %1500 = vmatmul.msk.bf16.vlgmr.msra.gmra.mxu1 %vm233_vm1, %v1522_v4 }
 0x157   : > { %v566_v27 = vpop.f32.mrf.mxu2 }
 0x158   : > { %v597_v28 = vadd.f32 %v566_v27, %v489_v21  ;;  %v461_v29 = vpop.f32.mrf.mxu3 }
 0x159   : > { %v492_v30 = vadd.f32 %v461_v29, %v366_v51 }
 0x15a   : > { %v482_v32 = vpop.f32.mrf.mxu0 }
 0x15b   : > { %v547_v33 = vpop.f32.mrf.mxu1  ;;  %v496_v34 = vadd.f32 %v482_v32, %v387_v17 }
 0x15c   : > { %v596_v35 = vadd.f32 %v547_v33, %v488_v55  ;;  %1503 = vmatmul.msk.bf16.gmra.mxu2 %vm233_vm1, %v1523_v22 }
 0x15f   : > { %v569_v36 = vpop.f32.mrf.mxu2 }
 0x160   : > { %v600_v37 = vadd.f32 %v569_v36, %v492_v30  ;;  %v463_v38 = vpop.f32.mrf.mxu3 }
 0x161   : > { %v495_v39 = vadd.f32 %v463_v38, %v368_v61 }
 0x162   : > { %v653_v40 = vpop.f32.mrf.mxu0 }
 0x163   : > { %v550_v41 = vpop.f32.mrf.mxu1  ;;  %v701_v42 = vadd.f32 %v653_v40, %v593_v26 }
 0x164   : > { %v599_v43 = vadd.f32 %v550_v41, %v491_v1 }
 0x166   : > { %1501 = vmatmul.msk.bf16.gmra.mxu1 %vm233_vm1, %v1523_v22 }
 0x167   : > { %v571_v44 = vpop.f32.mrf.mxu2 }
 0x168   : > { %v603_v45 = vadd.f32 %v571_v44, %v495_v39  ;;  %v583_v46 = vpop.f32.mrf.mxu3 }
 0x169   : > { %v595_v47 = vadd.f32 %v583_v46, %v487_v7 }
 0x16a   : > { %v655_v48 = vpop.f32.mrf.mxu0 }
 0x16b   : > { %v552_v49 = vpop.f32.mrf.mxu1  ;;  %v704_v50 = vadd.f32 %v655_v48, %v596_v35 }
 0x16c   : > { %v602_v51 = vadd.f32 %v552_v49, %v494_v10 }
 0x16f   : > { %v691_v52 = vpop.f32.mrf.mxu2 }
 0x170   : > { %v1848_v53 = vadd.f32 %v691_v52, %v595_v47  ;;  %v585_v54 = vpop.f32.mrf.mxu3 }
 0x171   : > { %v598_v55 = vadd.f32 %v585_v54, %v490_v16 }
 0x172   : > { %v658_v56 = vpop.f32.mrf.mxu0 }
 0x173   : > { %v707_v57 = vadd.f32 %v658_v56, %v599_v43  ;;  %v672_v58 = vpop.f32.mrf.mxu1 }
 0x174   : > { %v1850_v59 = vadd.f32 %v672_v58, %v594_v19 }
 0x177   : > { %v693_v60 = vpop.f32.mrf.mxu2 }
 0x178   : > { %v1852_v61 = vadd.f32 %v693_v60, %v598_v55  ;;  %v588_v62 = vpop.f32.mrf.mxu3 }
 0x179   : > { %v601_v63 = vadd.f32 %v588_v62, %v493_v24 }
 0x17a   : > { %v660_v0 = vpop.f32.mrf.mxu0 }
 0x17b   : > { %v710_v1 = vadd.f32 %v660_v0, %v602_v51  ;;  %v674_v2 = vpop.f32.mrf.mxu1 }
 0x17c   : > { %v1854_v3 = vadd.f32 %v674_v2, %v597_v28 }
 0x17f   : > { %v696_v4 = vpop.f32.mrf.mxu2 }
 0x180   : > { %v1856_v5 = vadd.f32 %v696_v4, %v601_v63  ;;  %v590_v6 = vpop.f32.mrf.mxu3 }
 0x181   : > { %v604_v7 = vadd.f32 %v590_v6, %v496_v34 }
 0x182   : > { %v780_v8 = vpop.f32.mrf.mxu0 }
 0x183   : > { %v677_v9 = vpop.f32.mrf.mxu1  ;;  %v810_v4 = vadd.f32 %v780_v8, %v1850_v59 }
 0x184   : > { %v1858_v10 = vadd.f32 %v677_v9, %v600_v37 }
 0x187   : > { %v698_v11 = vpop.f32.mrf.mxu2 }
 0x188   : > { %v1860_v12 = vadd.f32 %v698_v11, %v604_v7  ;;  %v761_v13 = vpop.f32.mrf.mxu3  ;;  %v1157_v11 = vpop.permute.xlu1 %1156 }
 0x189   : > { %v809_v14 = vadd.f32 %v761_v13, %v701_v42 }
 0x18a   : > { %v1862_v15 = vpop.f32.mrf.mxu0 }
 0x18b   : > { %v679_v16 = vpop.f32.mrf.mxu1  ;;  %v813_v59 = vadd.f32 %v1862_v15, %v1854_v3 }
 0x18c   : > { %v1864_v17 = vadd.f32 %v679_v16, %v603_v45 }
 0x18f   : > { %v869_v18 = vpop.f32.mrf.mxu2 }
 0x190   : > { %v917_v19 = vadd.f32 %v869_v18, %v809_v14  ;;  %v763_v20 = vpop.f32.mrf.mxu3 }
 0x191   : > { %v812_v21 = vadd.f32 %v763_v20, %v704_v50 }
 0x192   : > { %v1866_v22 = vpop.f32.mrf.mxu0 }
 0x193   : > { %v799_v23 = vpop.f32.mrf.mxu1 }
 0x194   : > { %v811_v60 = vadd.f32 %v799_v23, %v1848_v53 }
 0x197   : > { %v871_v24 = vpop.f32.mrf.mxu2 }
 0x198   : > { %v920_v25 = vadd.f32 %v871_v24, %v812_v21  ;;  %v766_v26 = vpop.f32.mrf.mxu3 }
 0x199   : > { %v815_v27 = vadd.f32 %v766_v26, %v707_v57  ;;  %v1152_v57 = vpop.permute.xlu0 %1151 }
 0x19a   : > { %v1868_v28 = vpop.f32.mrf.mxu0 }
 0x19b   : > { %v801_v29 = vpop.f32.mrf.mxu1 }
 0x19f   : > { %v874_v30 = vpop.f32.mrf.mxu2 }
 0x1a0   : > { %v923_v31 = vadd.f32 %v874_v30, %v815_v27  ;;  %v768_v32 = vpop.f32.mrf.mxu3 }
 0x1a1   : > { %v818_v33 = vadd.f32 %v768_v32, %v710_v1 }
 0x1a2   : > { %v907_v34 = vpop.f32.mrf.mxu0 }
 0x1a3   : > { %v804_v35 = vpop.f32.mrf.mxu1  ;;  %v919_v1 = vadd.f32 %v907_v34, %v811_v60 }
 0x1a7   : > { %v876_v36 = vpop.f32.mrf.mxu2 }
 0x1a8   : > { %v1870_v37 = vadd.f32 %v876_v36, %v818_v33  ;;  %v888_v38 = vpop.f32.mrf.mxu3 }
 0x1a9   : > { %v918_v14 = vadd.f32 %v888_v38, %v810_v4 }
 0x1aa   : > { %v909_v39 = vpop.f32.mrf.mxu0 }
 0x1ab   : > { %v1872_v40 = vpop.f32.mrf.mxu1 }
 0x1af   : > { %v996_v41 = vpop.f32.mrf.mxu2 }
 0x1b0   : > { %v890_v42 = vpop.f32.mrf.mxu3  ;;  %v1026_v20 = vadd.f32 %v996_v41, %v918_v14 }
 0x1b2   : > { %v912_v43 = vpop.f32.mrf.mxu0 }
 0x1b3   : > { %v977_v44 = vpop.f32.mrf.mxu1 }
 0x1b4   : > { %v1025_v54 = vadd.f32 %v977_v44, %v917_v19  ;;  %v814_v19 = vadd.f32 %v801_v29, %v1852_v61  ;;  %v921_v29 = vadd.f32 %v890_v42, %v813_v59  ;;  %v1162_v44 = vpop.permute.xlu2 %1161  ;;  %v816_v42 = vadd.f32 %v1866_v22, %v1858_v10 }
 0x1b5   : > { %v820_v22 = vadd.f32 %v1872_v40, %v1860_v12 }
 0x1b6   : > { %v922_v27 = vadd.f32 %v909_v39, %v814_v19  ;;  %v817_v39 = vadd.f32 %v804_v35, %v1856_v5 }
 0x1b7   : > { %v998_v45 = vpop.f32.mrf.mxu2 }
 0x1b8   : > { %v1874_v46 = vpop.f32.mrf.mxu3 }
 0x1b9   : > { %v924_v4 = vadd.f32 %v1874_v46, %v816_v42  ;;  %v819_v46 = vadd.f32 %v1868_v28, %v1864_v17 }
 0x1ba   : > { %v1876_v47 = vpop.f32.mrf.mxu0 }
 0x1bb   : > { %v979_v48 = vpop.f32.mrf.mxu1  ;;  %v928_v19 = vadd.f32 %v1876_v47, %v820_v22 }
 0x1bc   : > { %v1028_v2 = vadd.f32 %v979_v48, %v920_v25 }
 0x1bf   : > { %v1878_v49 = vpop.f32.mrf.mxu2 }
 0x1c0   : > { %v1880_v50 = vpop.f32.mrf.mxu3 }
 0x1c2   : > { %v1085_v51 = vpop.f32.mrf.mxu0 }
 0x1c3   : > { %v982_v52 = vpop.f32.mrf.mxu1  ;;  %v1133_v55 = vadd.f32 %v1085_v51, %v1025_v54  ;;  %v1029_v54 = vadd.f32 %v998_v45, %v921_v29 }
 0x1c4   : > { %v1031_v8 = vadd.f32 %v982_v52, %v923_v31  ;;  %v925_v52 = vadd.f32 %v912_v43, %v817_v39 }
 0x1c5   : > { %v1169_v63 = vadd.f32 %v1152_v57, %v1133_v55 }
 0x1c7   : > { %v1882_v56 = vpop.f32.mrf.mxu2  ;;  %v1181_v9 = vsub.f32 0.0, %v1169_v63 }
 0x1c8   : > { %v1015_v58 = vpop.f32.mrf.mxu3 }
 0x1c9   : > { %v1027_v6 = vadd.f32 %v1015_v58, %v919_v1  ;;  %v1193_v24 = vmul.f32 1.442695, %v1181_v9 }
 0x1ca   : > { %v1087_v62 = vpop.f32.mrf.mxu0 }
 0x1cb   : > { %v984_v0 = vpop.f32.mrf.mxu1  ;;  %v1136_v7 = vadd.f32 %v1087_v62, %v1028_v2  ;;  %1563 = vpow2.f32 %v1193_v24 }
 0x1cc   : > { %v1034_v1 = vadd.f32 %v984_v0, %v1870_v37  ;;  %v1032_v37 = vadd.f32 %v1878_v49, %v924_v4  ;;  %v927_v49 = vadd.f32 %v1880_v50, %v819_v46 }
 0x1cd   : > { %v1172_v21 = vadd.f32 %v1157_v11, %v1136_v7 }
 0x1cf   : > { %v1123_v13 = vpop.f32.mrf.mxu2  ;;  %v1184_v32 = vsub.f32 0.0, %v1172_v21 }
 0x1d0   : > { %v1135_v16 = vadd.f32 %v1123_v13, %v1027_v6  ;;  %v1017_v18 = vpop.f32.mrf.mxu3 }
 0x1d1   : > { %v1030_v34 = vadd.f32 %v1017_v18, %v922_v27  ;;  %v1199_v55 = vmul.f32 1.442695, %v1184_v32  ;;  %v1564_v63 = vpop.eup %1563 }
 0x1d2   : > { %v1171_v53 = vadd.f32 %v1152_v57, %v1135_v16  ;;  %v1090_v23 = vpop.f32.mrf.mxu0  ;;  %v1217_v13 = vadd.f32 1.0, %v1564_v63  ;;  %v1167_v16 = vpop.permute.xlu1 %1166 }
 0x1d3   : > { %v1104_v26 = vpop.f32.mrf.mxu1  ;;  %v1139_v38 = vadd.f32 %v1090_v23, %v1031_v8 }
 0x1d4   : > { %v1183_v25 = vsub.f32 0.0, %v1171_v53  ;;  %v1134_v30 = vadd.f32 %v1104_v26, %v1026_v20 }
 0x1d5   : > { %v1175_v15 = vadd.f32 %v1162_v44, %v1139_v38  ;;  %v1035_v38 = vadd.f32 %v1882_v56, %v927_v49 }
 0x1d6   : > { %v1197_v33 = vmul.f32 1.442695, %v1183_v25  ;;  %v1170_v36 = vadd.f32 %v1152_v57, %v1134_v30 }
 0x1d7   : > { %v1125_v61 = vpop.f32.mrf.mxu2  ;;  %v1187_v7 = vsub.f32 0.0, %v1175_v15 }
 0x1d8   : > { %1565 = vpow2.f32 %v1197_v33  ;;  %v1182_v41 = vsub.f32 0.0, %v1170_v36  ;;  %v1138_v48 = vadd.f32 %v1125_v61, %v1030_v34  ;;  %v1020_v51 = vpop.f32.mrf.mxu3 }
 0x1d9   : > { %v1033_v35 = vadd.f32 %v1020_v51, %v925_v52  ;;  %v1205_v20 = vmul.f32 1.442695, %v1187_v7 }
 0x1da   : > { %v1195_v58 = vmul.f32 1.442695, %v1182_v41  ;;  %v1174_v3 = vadd.f32 %v1157_v11, %v1138_v48  ;;  %v1092_v57 = vpop.f32.mrf.mxu0 }
 0x1db   : > { %v1106_v31 = vpop.f32.mrf.mxu1  ;;  %v1142_v43 = vadd.f32 %v1092_v57, %v1034_v1 }
 0x1dc   : > { %v1186_v60 = vsub.f32 0.0, %v1174_v3  ;;  %v1137_v62 = vadd.f32 %v1106_v31, %v1029_v54  ;;  %1567 = vpow2.f32 %v1195_v58 }
 0x1dd   : > { %1569 = vpow2.f32 %v1199_v55  ;;  %v1178_v21 = vadd.f32 %v1167_v16, %v1142_v43 }
 0x1de   : > { %v1566_v2 = vpop.eup %1565  ;;  %v1203_v5 = vmul.f32 1.442695, %v1186_v60  ;;  %v1173_v45 = vadd.f32 %v1157_v11, %v1137_v62 }
 0x1df   : > { %v1219_v6 = vadd.f32 1.0, %v1566_v2  ;;  %v1128_v9 = vpop.f32.mrf.mxu2  ;;  %v1190_v8 = vsub.f32 0.0, %v1178_v21 }
 0x1e0   : > { %1571 = vpow2.f32 %v1203_v5  ;;  %v1185_v14 = vsub.f32 0.0, %v1173_v45  ;;  %v1141_v10 = vadd.f32 %v1128_v9, %v1033_v35  ;;  %v1022_v53 = vpop.f32.mrf.mxu3 }
 0x1e1   : > { %1573 = vrcp.f32 %v1219_v6  ;;  %v1036_v17 = vadd.f32 %v1022_v53, %v928_v19 }
 0x1e2   : > { %v1201_v0 = vmul.f32 1.442695, %v1185_v14  ;;  %v1177_v11 = vadd.f32 %v1162_v44, %v1141_v10  ;;  %v1568_v18 = vpop.eup %1567  ;;  %1575 = vrcp.f32 %v1217_v13 }
 0x1e3   : > { %v1109_v23 = vpop.f32.mrf.mxu1  ;;  %v1570_v24 = vpop.eup %1569  ;;  %v1218_v26 = vadd.f32 1.0, %v1568_v18 }
 0x1e4   : > { %v1189_v12 = vsub.f32 0.0, %v1177_v11  ;;  %v1140_v40 = vadd.f32 %v1109_v23, %v1032_v37  ;;  %1577 = vpow2.f32 %v1201_v0  ;;  %v1220_v30 = vadd.f32 1.0, %v1570_v24 }
 0x1e5   : > { %1579 = vrcp.f32 %v1218_v26 }
 0x1e6   : > { %v1572_v27 = vpop.eup %1571  ;;  %v1209_v25 = vmul.f32 1.442695, %v1189_v12  ;;  %v1176_v28 = vadd.f32 %v1162_v44, %v1140_v40  ;;  %1581 = vpow2.f32 %v1205_v20  ;;  %v1211_v44 = vmul.f32 1.442695, %v1190_v8 }
 0x1e7   : > { %v1574_v47 = vpop.eup %1573  ;;  %v1222_v59 = vadd.f32 1.0, %v1572_v27  ;;  %v1130_v32 = vpop.f32.mrf.mxu2 }
 0x1e8   : > { %v1242_v50 = vpack.c.bf16 %v1574_v47, %v1574_v47  ;;  %1583 = vpow2.f32 %v1209_v25  ;;  %v1188_v33 = vsub.f32 0.0, %v1176_v28  ;;  %v1144_v34 = vadd.f32 %v1130_v32, %v1036_v17  ;;  %v1576_v36 = vpop.eup %1575 }
 0x1e9   : > { %1585 = vrcp.f32 %v1222_v59 }
 0x1ea   : > { %1251 = vst.msk [vmem:[%s1905_s28 + $0x8] sm:$0xf] %vm1250_vm10, %v1242_v50  ;;  %v1207_v61 = vmul.f32 1.442695, %v1188_v33  ;;  %v1180_v29 = vadd.f32 %v1167_v16, %v1144_v34  ;;  %v1578_v41 = vpop.eup %1577  ;;  %1587 = vrcp.f32 %v1220_v30 }
 0x1eb   : > { %v1111_v48 = vpop.f32.mrf.mxu1  ;;  %v1580_v39 = vpop.eup %1579  ;;  %v1221_v51 = vadd.f32 1.0, %v1578_v41 }
 0x1ec   : > { %v1192_v54 = vsub.f32 0.0, %v1180_v29  ;;  %v1143_v55 = vadd.f32 %v1111_v48, %v1035_v38  ;;  %v1582_v58 = vpop.eup %1581  ;;  %v1241_v3 = vpack.c.bf16 %v1580_v39, %v1576_v36  ;;  %1589 = vpow2.f32 %v1207_v61 }
 0x1ed   : > { %1591 = vrcp.f32 %v1221_v51  ;;  %v1223_v63 = vadd.f32 1.0, %v1582_v58 }
 0x1ee   : > { %v1584_v15 = vpop.eup %1583  ;;  %v1215_v56 = vmul.f32 1.442695, %v1192_v54  ;;  %v1179_v31 = vadd.f32 %v1167_v16, %v1143_v55  ;;  %1249 = vst [vmem:[%s1905_s28] sm:$0xff] %v1241_v3  ;;  %1593 = vpow2.f32 %v1211_v44 }
 0x1ef   : > { %v1586_v52 = vpop.eup %1585  ;;  %v1225_v60 = vadd.f32 1.0, %v1584_v15 }
 0x1f0   : > { %v1244_v57 = vpack.c.bf16 %v1586_v52, %v1586_v52  ;;  %1595 = vpow2.f32 %v1215_v56  ;;  %v1191_v62 = vsub.f32 0.0, %v1179_v31  ;;  %v1588_v42 = vpop.eup %1587 }
 0x1f1   : > { %1597 = vrcp.f32 %v1225_v60 }
 0x1f2   : > { %1253 = vst.msk [vmem:[%s1905_s28 + $0x14] sm:$0xf] %vm1250_vm10, %v1244_v57  ;;  %v1213_v1 = vmul.f32 1.442695, %v1191_v62  ;;  %v1590_v2 = vpop.eup %1589 }
 0x1f3   : > { %v1592_v5 = vpop.eup %1591  ;;  %v1224_v35 = vadd.f32 1.0, %v1590_v2 }
 0x1f4   : > { %1599 = vpow2.f32 %v1213_v1  ;;  %v1594_v45 = vpop.eup %1593  ;;  %v1243_v4 = vpack.c.bf16 %v1592_v5, %v1588_v42 }
 0x1f5   : > { %1601 = vrcp.f32 %v1223_v63  ;;  %v1226_v9 = vadd.f32 1.0, %v1594_v45 }
 0x1f6   : > { %v1596_v6 = vpop.eup %1595  ;;  %1603 = vrcp.f32 %v1224_v35  ;;  %1252 = vst [vmem:[%s1905_s28 + $0xc] sm:$0xff] %v1243_v4 }
 0x1f7   : > { %v1598_v7 = vpop.eup %1597  ;;  %v1228_v43 = vadd.f32 1.0, %v1596_v6 }
 0x1f8   : > { %v1246_v13 = vpack.c.bf16 %v1598_v7, %v1598_v7 }
 0x1f9   : > { %1605 = vrcp.f32 %v1228_v43 }
 0x1fa   : > { %v1600_v14 = vpop.eup %1599  ;;  %1255 = vst.msk [vmem:[%s1905_s28 + $0x20] sm:$0xf] %vm1250_vm10, %v1246_v13  ;;  %1607 = vrcp.f32 %v1226_v9 }
 0x1fb   : > { %v1602_v16 = vpop.eup %1601  ;;  %v1227_v10 = vadd.f32 1.0, %v1600_v14 }
 0x1fc   : > { %v1604_v22 = vpop.eup %1603 }
 0x1fd   : > { %v1245_v37 = vpack.c.bf16 %v1604_v22, %v1602_v16  ;;  %1609 = vrcp.f32 %v1227_v10 }
 0x1ff   : > { %v1606_v0 = vpop.eup %1605  ;;  %1254 = vst [vmem:[%s1905_s28 + $0x18] sm:$0xff] %v1245_v37 }
 0x200   : > { %v1248_v11 = vpack.c.bf16 %v1606_v0, %v1606_v0  ;;  %v1608_v18 = vpop.eup %1607 }
 0x202   : > { %1257 = vst.msk [vmem:[%s1905_s28 + $0x2c] sm:$0xf] %vm1250_vm10, %v1248_v11 }
 0x203   : > { %v1610_v46 = vpop.eup %1609 }
 0x204   : > { %v1247_v19 = vpack.c.bf16 %v1610_v46, %v1608_v18 }
 0x206   : > { %1256 = vst [vmem:[%s1905_s28 + $0x24] sm:$0xff] %v1247_v19 }
 0x207 PF: > { %s13_s14 = sadd.s32 1, %s1633_s14   ;;  %s1933_s12 = smov %s1629_s13 }
 0x208   : > { %p10_p5 = scmp.ge.s32.totalorder %s13_s14, 4   ;;  %s1934_s13 = smov %s1936_s15 }
 0x20a   :  { %12 = sbr.rel (!%p10_p5) target bundleno = 2 (0x2), region = 70 }

</bundles_post_ra>
